<compile_context>
chip_gen: v6e
topology: v6e:2x2x1
jax: 0.10.0
libtpu: 0.0.40
codegen_flags: <defaults>
</compile_context>

<pallas_src>
import jax
import jax.numpy as jnp
from jax.experimental import pallas as pl
from jax.experimental.pallas import tpu as pltpu

_LANE = 128  # lane width (last-dim granularity)


def _round_up(n: int, m: int) -> int:
    return ((n + m - 1) // m) * m


def _sublane(dtype) -> int:
    """Minimum sublane multiple for a dtype: 8 (32-bit), 16 (16-bit), 32 (8-bit)."""
    bits = jnp.dtype(dtype).itemsize * 8
    return max(8, 256 // bits)


def _scale_kernel(w_ref, x_ref, o_ref):
    # w_ref: (1,) float32 parameter in SMEM.  x_ref / o_ref: VMEM tiles.
    # Multiply in f32 (parameter precision), cast only the result.
    w = w_ref[0]
    o_ref[...] = (w * x_ref[...].astype(jnp.float32)).astype(o_ref.dtype)


def _run(w32, x2d, block_shape, grid, index_map):
    rows, cols = x2d.shape
    tile_bytes = block_shape[0] * block_shape[1] * x2d.dtype.itemsize
    # in + out streams, double-buffered, plus headroom.  Floor of 32 MiB lifts
    # v5e's 16 MiB scoped default; cap keeps us well under v7x's 64 MiB VMEM.
    vmem_limit = int(min(48 << 20, max(32 << 20, 4 * tile_bytes + (4 << 20))))
    return pl.pallas_call(
        _scale_kernel,
        out_shape=jax.ShapeDtypeStruct((rows, cols), x2d.dtype),
        grid=grid,
        in_specs=[
            pl.BlockSpec(memory_space=pltpu.MemorySpace.SMEM),  # w12 scalar
            pl.BlockSpec(block_shape, index_map),               # x tile (double-buffered)
        ],
        out_specs=pl.BlockSpec(block_shape, index_map),
        compiler_params=pltpu.CompilerParams(
            # TODO(synk): on v7x confirm via xprof that this axis shards across
            # both TensorCores; if not, switch to pltpu.CORE_PARALLEL.
            dimension_semantics=("parallel",),
            vmem_limit_bytes=vmem_limit,
        ),
    )(w32, x2d)


def simple_linear_forward(w12: jax.Array, x: jax.Array,
                          *, block_rows: int = 1024, max_cols: int = 1024) -> jax.Array:
    """Computes w12 * x (elementwise scalar scale), matching SimpleLinearModel.forward."""
    orig_shape = x.shape
    dtype = x.dtype
    n = int(x.size)
    if n == 0:
        return x

    w32 = jnp.asarray(w12, jnp.float32).reshape(1)  # keep parameter in f32 (SMEM scalar)
    sub = _sublane(dtype)

    if n % _LANE == 0:
        # Fast path: padding-free, lane-dense 2-D view (reshape is a bitcast).
        cols = _LANE
        for c in range(min(max_cols, n), _LANE - 1, -_LANE):
            if n % c == 0:
                cols = c
                break
        rows = n // cols
        x2d = x.reshape(rows, cols)
        if rows % sub == 0:
            brows = max(sub, (min(block_rows, rows) // sub) * sub)
        elif rows <= block_rows:
            brows = rows                              # full-rows block (equals array dim)
        else:
            brows = max(sub, (block_rows // sub) * sub)  # ragged edge block is masked
        out = _run(w32, x2d, (brows, cols), (pl.cdiv(rows, brows),),
                   lambda i: (i, 0))
    else:
        # Ragged element count: (1, n) view, column tiles; Pallas masks the edge
        # block -- still no jnp.pad and no [:n] slice (no extra HBM passes).
        x2d = x.reshape(1, n)
        bcols = min(block_rows * max_cols, _round_up(n, _LANE))
        out = _run(w32, x2d, (1, bcols), (pl.cdiv(n, bcols),),
                   lambda i: (0, i))

    return out.reshape(orig_shape)


if __name__ == "__main__":
    key = jax.random.PRNGKey(0)

    # Parameter: module init is nn.Parameter(torch.tensor([0.0])); use 0.5 so
    # the multiply is observable (semantics identical).
    w12 = jnp.array([0.5], dtype=jnp.float32)

    # Fast path: lane/sublane-dense f32 input.
    x = jax.random.normal(key, (8, 128), dtype=jnp.float32)
    y = simple_linear_forward(w12, x)
    jax.block_until_ready(y)
    assert y.shape == x.shape, (y.shape, x.shape)
    assert jnp.allclose(y, w12[0] * x, atol=1e-6)

    # Literal module case (ragged path): x = torch.tensor([2.0]).
    x1 = jnp.array([2.0], dtype=jnp.float32)
    y1 = simple_linear_forward(w12, x1)
    jax.block_until_ready(y1)
    assert jnp.allclose(y1, w12[0] * x1, atol=1e-6)

    # Low-precision activations: parameter stays f32, result cast back to bf16.
    xb = jax.random.normal(key, (16, 256), dtype=jnp.bfloat16)
    yb = simple_linear_forward(w12, xb)
    jax.block_until_ready(yb)
    ref_b = (w12[0] * xb.astype(jnp.float32)).astype(jnp.bfloat16)
    assert yb.dtype == jnp.bfloat16
    assert jnp.allclose(yb.astype(jnp.float32), ref_b.astype(jnp.float32),
                        atol=1e-2, rtol=1e-2)

    print("KERNEL_OK")
</pallas_src>

<mosaic_0001>
module attributes {stable_mosaic.version = 11 : i64} {
  func.func @_scale_kernel(%arg0: i32, %arg1: memref<1xf32, #tpu.memory_space<smem>>, %arg2: memref<1x1024xf32, #tpu.memory_space<vmem>>, %arg3: memref<1x1024xf32, #tpu.memory_space<vmem>>) attributes {dimension_semantics = [#tpu.dimension_semantics<parallel>], iteration_bounds = array<i64: 1>, scalar_prefetch = 0 : i64, scratch_operands = 0 : i64, tpu.core_type = #tpu.core_type<tc>, window_params = [{transform_indices = @transform_0, window_bounds = array<i64: 1>}, {transform_indices = @transform_1, window_bounds = array<i64: 1, 1024>}, {transform_indices = @transform_2, window_bounds = array<i64: 1, 1024>}]} {
    %c0 = arith.constant 0 : index
    %0 = memref.load %arg1[%c0] : memref<1xf32, #tpu.memory_space<smem>>
    %c0_0 = arith.constant 0 : index
    %c0_1 = arith.constant 0 : index
    %1 = vector.load %arg2[%c0_0, %c0_1] : memref<1x1024xf32, #tpu.memory_space<vmem>>, vector<1x1024xf32>
    %2 = vector.broadcast %0 : f32 to vector<1x1024xf32>
    %3 = arith.mulf %2, %1 : vector<1x1024xf32>
    %c0_2 = arith.constant 0 : index
    %c0_3 = arith.constant 0 : index
    %4 = vector.load %arg3[%c0_2, %c0_3] : memref<1x1024xf32, #tpu.memory_space<vmem>>, vector<1x1024xf32>
    tpu.vector_store %arg3[%c0_2, %c0_3], %3 {strides = array<i32>} : memref<1x1024xf32, #tpu.memory_space<vmem>>, vector<1x1024xf32>,
    return
  }
  func.func @transform_0(%arg0: i32) -> i32 {
    %c0_i32 = arith.constant 0 : i32
    %c0_i32_0 = arith.constant 0 : i32
    return %c0_i32 : i32
  }
  func.func @transform_1(%arg0: i32) -> (i32, i32) {
    %c0_i32 = arith.constant 0 : i32
    %c0_i32_0 = arith.constant 0 : i32
    return %arg0, %c0_i32 : i32, i32
  }
  func.func @transform_2(%arg0: i32) -> (i32, i32) {
    %c0_i32 = arith.constant 0 : i32
    %c0_i32_0 = arith.constant 0 : i32
    return %arg0, %c0_i32 : i32, i32
  }
}

</mosaic_0001>

<bundles_post_ra>
// kernel: tpu_custom_call.1
= control target key start
LH: loop header
LB: loop body
LE: loop exit
PB: predicated region body
PF: predicated region fallthrough
CT: control target
= control target key end

     0   :  { %8 = vsyncpa [#allocation4], 0  ;;  %s117_s0 = inlined_call_operand.<no memory space> [shape: f32[1], index: 0, kind: input, shape index: {}]   ;;  %s118_s1 = inlined_call_operand.hbm [shape: f32[1,1024], index: 1, kind: input, shape index: {}]   ;;  %s119_s2 = inlined_call_operand.hbm [shape: f32[1,1024], index: 2, kind: output, shape index: {}]  }
   0x1   :  { %9 = vsyncpa [#allocation5], 0  ;;  %s91_s9 = smov [#allocation3]  }
   0x2   :  { %s18_s10 = sshll.u32 %s91_s9, 4  ;;  %s19_s10 = int_to_ptr.vmem [resolvable:$true] %s18_s10 }
   0x3   :  { %s55_s11 = scalar_lea.vmem %s19_s10, 128  ;;  %p60_p1 = scmp.lt.s32.totalorder %s19_s10, %s19_s10 }
   0x4   :  { %p56_p0 = scmp.ne.s32.totalorder %s19_s10, %s55_s11  ;;  %p61_p2 = scmp.lt.s32.totalorder %s55_s11, %s55_s11 }
   0x6   :  { %p62_p3 = por %p61_p2, %p60_p1 }
   0x8   :  { %p63_p4 = pnand %p62_p3, %p56_p0 }
   0xa   :  { %66 = shalt.err (!%p63_p4)
}
   0xb   :  { %21 = dma.hbm_to_vmem [thread:$0]  %s118_s1, 128, %s19_s10, [#allocation4]  }
   0xc   :  { %87 = dma.done.wait [#allocation4], 128  }
   0xd   :  { %88 = vsyncadd [#allocation4], 4294967168  ;;  %v27_v0 = vstv %s117_s0  ;;  %s92_s16 = smov [#allocation6]   ;;  %v26_v1 = vld [vmem:[#allocation3] sm:$0xff] }
   0xe   :  { %s36_s17 = sshll.u32 %s92_s16, 4  ;;  %v28_v2 = vmul.f32 %v27_v0, %v26_v1  ;;  %s37_s17 = int_to_ptr.vmem [resolvable:$true] %s36_s17 }
   0xf   :  { %s67_s18 = scalar_lea.vmem %s37_s17, 128  ;;  %p72_p6 = scmp.lt.s32.totalorder %s37_s17, %s37_s17 }
  0x10   :  { %29 = vst [vmem:[#allocation6] sm:$0xff] %v28_v2  ;;  %p68_p5 = scmp.ne.s32.totalorder %s37_s17, %s67_s18  ;;  %p73_p7 = scmp.lt.s32.totalorder %s67_s18, %s67_s18 }
  0x12   :  { %p74_p8 = por %p73_p7, %p72_p6 }
  0x14   :  { %p75_p9 = pnand %p74_p8, %p68_p5 }
  0x16   :  { %78 = shalt.err (!%p75_p9)
}
  0x17   :  { %39 = dma.vmem_to_hbm [thread:$0]  %s37_s17, 128, %s119_s2, [#allocation5]  }
  0x18   :  { %89 = dma.done.wait [#allocation5], 128  }
  0x19   :  { %90 = vsyncadd [#allocation5], 4294967168 }
  0x1a   :  { %43 = vsyncpa [#allocation4], 1 }
  0x1b   :  { %44 = vsyncpa [#allocation5], 1 }

</bundles_post_ra>
